<compile_context>
chip_gen: v7x
topology: tpu7x:2x2x1
jax: 0.10.0
libtpu: 0.0.40
codegen_flags: <defaults>
</compile_context>

<pallas_src>
import jax
import jax.numpy as jnp
import numpy as np
from jax import lax
from jax.experimental import pallas as pl
from jax.experimental.pallas import tpu as pltpu


def _matmul_bias_relu_kernel(x_ref, w_ref, b_ref, o_ref):
    """One im2col row-tile per grid step.

    x_ref: (TM, K)  bf16 im2col rows (K = 9*Cin)
    w_ref: (K, Cp)  bf16 flattened conv weight, Cout padded to Cp=128 lanes
    b_ref: (1, Cp)  f32 bias (zero-padded lanes)
    o_ref: (TM, Cp) f32 = relu(x @ w + b)
    """
    acc = jnp.dot(x_ref[...], w_ref[...], preferred_element_type=jnp.float32)
    acc = acc + b_ref[...]
    o_ref[...] = jnp.maximum(acc, 0.0)


def _pick_tile_m(m):
    """Sublane-aligned M tile; prefer >= 2 grid steps so v7x's 2 TCs both work."""
    for tm in (512, 256, 128, 64, 32, 16, 8):
        if m % tm == 0 and m // tm >= 2:
            return tm
    return m


def upsampler_net_face_forward(x_nchw, weight, bias, upscale=4):
    """x_nchw: (N, nf, H, W) f32; weight: (Cout, nf, 3, 3) OIHW; bias: (Cout,).

    Returns (N, out_nc, H*upscale, W*upscale) f32 — matches
    Conv2d(pad=1) -> PixelShuffle(upscale) -> ReLU.
    """
    N, Cin, H, W = x_nchw.shape
    Cout = weight.shape[0]                       # out_nc * upscale**2
    r = upscale
    out_nc = Cout // (r * r)
    K = 9 * Cin
    Cp = ((Cout + 127) // 128) * 128             # lane-dense padded Cout

    # --- layout glue (plain JAX): NCHW -> NHWC, pad=1 halo, im2col pre-shift.
    x_nhwc = jnp.transpose(x_nchw, (0, 2, 3, 1))
    x_pad = jnp.pad(x_nhwc, ((0, 0), (1, 1), (1, 1), (0, 0)))
    taps = [x_pad[:, ky:ky + H, kx:kx + W, :]
            for ky in range(3) for kx in range(3)]
    x_col = jnp.concatenate(taps, axis=-1)       # (N, H, W, 9*Cin), (ky,kx,ci)
    x_col = x_col.reshape(N * H * W, K).astype(jnp.bfloat16)

    # OIHW -> (ky, kx, ci, co) -> (9*Cin, Cout); pad Cout to a full lane tile.
    w_col = jnp.transpose(weight, (2, 3, 1, 0)).reshape(K, Cout)
    w_col = jnp.pad(w_col, ((0, 0), (0, Cp - Cout))).astype(jnp.bfloat16)
    b_pad = jnp.pad(bias, (0, Cp - Cout)).reshape(1, Cp).astype(jnp.float32)

    M = N * H * W
    TM = _pick_tile_m(M)

    cost = pl.CostEstimate(
        flops=2 * M * K * Cp,
        transcendentals=0,
        bytes_accessed=(x_col.size * 2 + w_col.size * 2 + b_pad.size * 4
                        + M * Cp * 4),
    )

    conv = pl.pallas_call(
        _matmul_bias_relu_kernel,
        out_shape=jax.ShapeDtypeStruct((M, Cp), jnp.float32),
        grid_spec=pl.GridSpec(
            grid=(M // TM,),
            in_specs=[
                pl.BlockSpec((TM, K), lambda i: (i, 0)),
                pl.BlockSpec((K, Cp), lambda i: (0, 0)),   # VMEM-resident
                pl.BlockSpec((1, Cp), lambda i: (0, 0)),   # VMEM-resident
            ],
            out_specs=pl.BlockSpec((TM, Cp), lambda i: (i, 0)),
        ),
        compiler_params=pltpu.CompilerParams(
            dimension_semantics=("parallel",),
            vmem_limit_bytes=32 * 1024 * 1024,
        ),
        cost_estimate=cost,
    )(x_col, w_col, b_pad)

    # --- slice off lane padding, PixelShuffle (pure permutation), back to NCHW.
    y = conv[:, :Cout].reshape(N, H, W, out_nc, r, r)      # [n, h, w, c, dy, dx]
    y = jnp.transpose(y, (0, 3, 1, 4, 2, 5))               # [n, c, h, dy, w, dx]
    return y.reshape(N, out_nc, H * r, W * r)


def reference_forward(x_nchw, weight, bias, upscale=4, matmul_dtype=jnp.float32):
    """Pure-JAX reference (lax conv -> pixel shuffle -> ReLU) for validation."""
    y = lax.conv_general_dilated(
        x_nchw.astype(matmul_dtype), weight.astype(matmul_dtype),
        window_strides=(1, 1), padding="SAME",
        dimension_numbers=("NCHW", "OIHW", "NCHW"),
        preferred_element_type=jnp.float32)
    y = y + bias.reshape(1, -1, 1, 1).astype(jnp.float32)
    N, C, H, W = y.shape
    r = upscale
    out_nc = C // (r * r)
    y = y.reshape(N, out_nc, r, r, H, W)
    y = jnp.transpose(y, (0, 1, 4, 2, 5, 3)).reshape(N, out_nc, H * r, W * r)
    return jnp.maximum(y, 0.0)


if __name__ == "__main__":
    nf, out_nc, upscale = 64, 3, 4
    N, H, W = 2, 8, 8
    Cout = out_nc * upscale * upscale

    key = jax.random.PRNGKey(0)
    kx_, kw_, kb_ = jax.random.split(key, 3)

    x = jax.random.normal(kx_, (N, nf, H, W), dtype=jnp.float32)
    weight = jax.random.normal(kw_, (Cout, nf, 3, 3), dtype=jnp.float32) * 0.05
    bias = jax.random.normal(kb_, (Cout,), dtype=jnp.float32) * 0.05

    out = jax.block_until_ready(
        upsampler_net_face_forward(x, weight, bias, upscale=upscale))
    assert out.shape == (N, out_nc, H * upscale, W * upscale), out.shape

    # bf16-matched reference (same MXU input rounding, f32 accumulate).
    ref_bf16 = jax.block_until_ready(
        reference_forward(x, weight, bias, upscale, matmul_dtype=jnp.bfloat16))
    np.testing.assert_allclose(np.asarray(out), np.asarray(ref_bf16),
                               rtol=1e-2, atol=1e-2)

    # Pure-f32 semantic sanity check (loose tolerance covers bf16 input rounding).
    ref_f32 = jax.block_until_ready(
        reference_forward(x, weight, bias, upscale, matmul_dtype=jnp.float32))
    np.testing.assert_allclose(np.asarray(out), np.asarray(ref_f32),
                               rtol=5e-2, atol=5e-2)

    print("KERNEL_OK")
</pallas_src>

<mosaic_0001>
module attributes {stable_mosaic.version = 11 : i64} {
  func.func @_matmul_bias_relu_kernel(%arg0: i32, %arg1: memref<64x576xbf16, #tpu.memory_space<vmem>>, %arg2: memref<576x128xbf16, #tpu.memory_space<vmem>>, %arg3: memref<1x128xf32, #tpu.memory_space<vmem>>, %arg4: memref<64x128xf32, #tpu.memory_space<vmem>>) attributes {dimension_semantics = [#tpu.dimension_semantics<parallel>], iteration_bounds = array<i64: 2>, scalar_prefetch = 0 : i64, scratch_operands = 0 : i64, tpu.core_type = #tpu.core_type<tc>, window_params = [{transform_indices = @transform_0, window_bounds = array<i64: 64, 576>}, {pipeline_mode = #tpu.pipeline_mode<synchronous>, transform_indices = @transform_1, window_bounds = array<i64: 576, 128>}, {pipeline_mode = #tpu.pipeline_mode<synchronous>, transform_indices = @transform_2, window_bounds = array<i64: 1, 128>}, {transform_indices = @transform_3, window_bounds = array<i64: 64, 128>}]} {
    %c0 = arith.constant 0 : index
    %c0_0 = arith.constant 0 : index
    %0 = vector.load %arg1[%c0, %c0_0] : memref<64x576xbf16, #tpu.memory_space<vmem>>, vector<64x576xbf16>
    %c0_1 = arith.constant 0 : index
    %c0_2 = arith.constant 0 : index
    %1 = vector.load %arg2[%c0_1, %c0_2] : memref<576x128xbf16, #tpu.memory_space<vmem>>, vector<576x128xbf16>
    %cst = arith.constant dense<0.000000e+00> : vector<64x128xf32>
    %2 = tpu.matmul %0, %1, %cst {dimension_numbers = #tpu.dot_dimension_numbers<[1], [0], [0], [1], [0, 0, 1, 1], [], []>} : vector<64x576xbf16>, vector<576x128xbf16>, vector<64x128xf32> -> vector<64x128xf32>
    %c0_3 = arith.constant 0 : index
    %c0_4 = arith.constant 0 : index
    %3 = vector.load %arg3[%c0_3, %c0_4] : memref<1x128xf32, #tpu.memory_space<vmem>>, vector<1x128xf32>
    %4 = vector.broadcast %3 : vector<1x128xf32> to vector<64x128xf32>
    %5 = arith.addf %2, %4 : vector<64x128xf32>
    %cst_5 = arith.constant 0.000000e+00 : f32
    %6 = vector.broadcast %cst_5 : f32 to vector<64x128xf32>
    %7 = arith.maximumf %5, %6 : vector<64x128xf32>
    %c0_6 = arith.constant 0 : index
    %c0_7 = arith.constant 0 : index
    %8 = vector.load %arg4[%c0_6, %c0_7] : memref<64x128xf32, #tpu.memory_space<vmem>>, vector<64x128xf32>
    tpu.vector_store %arg4[%c0_6, %c0_7], %7 {strides = array<i32>} : memref<64x128xf32, #tpu.memory_space<vmem>>, vector<64x128xf32>,
    return
  }
  func.func @transform_0(%arg0: i32) -> (i32, i32) {
    %c0_i32 = arith.constant 0 : i32
    %c0_i32_0 = arith.constant 0 : i32
    return %arg0, %c0_i32 : i32, i32
  }
  func.func @transform_1(%arg0: i32) -> (i32, i32) {
    %c0_i32 = arith.constant 0 : i32
    %c0_i32_0 = arith.constant 0 : i32
    %c0_i32_1 = arith.constant 0 : i32
    return %c0_i32, %c0_i32_0 : i32, i32
  }
  func.func @transform_2(%arg0: i32) -> (i32, i32) {
    %c0_i32 = arith.constant 0 : i32
    %c0_i32_0 = arith.constant 0 : i32
    %c0_i32_1 = arith.constant 0 : i32
    return %c0_i32, %c0_i32_0 : i32, i32
  }
  func.func @transform_3(%arg0: i32) -> (i32, i32) {
    %c0_i32 = arith.constant 0 : i32
    %c0_i32_0 = arith.constant 0 : i32
    return %arg0, %c0_i32 : i32, i32
  }
}

</mosaic_0001>

<bundles_post_ra>
// kernel: tpu_custom_call.1
= control target key start
LH: loop header
LB: loop body
LE: loop exit
PB: predicated region body
PF: predicated region fallthrough
CT: control target
= control target key end

     0   :  { %8 = vsyncpa [#allocation3], 0  ;;  %s1516_s0 = inlined_call_operand.vmem [shape: bf16[128,576], index: 0, kind: input, shape index: {}]   ;;  %s1517_s1 = inlined_call_operand.vmem [shape: bf16[576,128], index: 1, kind: input, shape index: {}]   ;;  %s1518_s2 = inlined_call_operand.vmem [shape: f32[1,128], index: 2, kind: input, shape index: {}]   ;;  %s1519_s3 = inlined_call_operand.hbm [shape: f32[128,128], index: 3, kind: output, shape index: {}]  }
   0x1   :  { %10 = vsyncpa [#allocation3 + $0x1], 0  ;;  %s1274_s12 = smov 0   ;;  %s1276_s13 = smov 0  }
   0x2   :  { %s1278_s14 = smov 0   ;;  %s1280_s15 = smov 0  }
   0x3 LB: > { %s1295_s16 = sadd.s32 4294967295, %s1249_s15   ;;  %s895_s17 = sadd.s32 4294967294, %s1249_s15   ;;  %s1249_s15 = sphi %s1280_s15, %s1525_s15   ;;  %s1245_s14 = sphi %s1278_s14, %s1524_s14   ;;  %s1241_s13 = sphi %s1276_s13, %s1523_s13   ;;  %s1237_s12 = sphi %s1274_s12, %s1522_s12  }
   0x4   : > { %s1299_s18 = sadd.s32 1, %s1249_s15   ;;  %s91_s19 = sadd.s32 1, %s1245_s14 }
   0x5   : > { %s88_s20 = ssub.s32 %s1249_s15, %s1299_s18  ;;  %p101_p0 = scmp.ne.s32.totalorder %s1245_s14, %s1241_s13 }
   0x6   : > { %p89_p1 = scmp.eq.s32.totalorder %s88_s20, 0  ;;  %p102_p2 = scmp.eq.s32.totalorder %s1295_s16, 1 }
   0x7   : > { %p107_p3 = scmp.ne.s32.totalorder %s1241_s13, %s1237_s12  ;;  %p108_p4 = scmp.eq.s32.totalorder %s895_s17, 1 }
   0x8   : > { %s1310_s21 = scalar_select %p89_p1, %s1245_s14, %s91_s19  }
   0x9   : > { %p1312_p5 = por %p102_p2, %p101_p0  ;;  %p1316_p6 = por %p108_p4, %p107_p3 }
   0xa   : > { %p898_p7 = scmp.ge.s32.totalorder %s1249_s15, 1  ;;  %p142_p8 = scmp.lt.s32.totalorder %s1249_s15, 3 }
   0xc   : > { %p143_p9 = pnand %p898_p7, %p142_p8 }
   0xd   : > { %v1123_v0 = vld [vmem:[%s1517_s1 + $0x40] sm:$0xff] (!%p143_p9)   ;;  %v1127_v4 = vld [vmem:[%s1517_s1 + $0x48] sm:$0xff] (!%p143_p9)   ;;  %v1131_v8 = vld [vmem:[%s1517_s1 + $0x50] sm:$0xff] (!%p143_p9)   ;;  %s900_s9 = sshll.u32 (!%p143_p9), %s1295_s16, 3  ;;  %vm595_vm0 = vcmask (!%p143_p9), 523264   ;;  %s164_s5 = sand.u32 (!%p143_p9), 1, %s1241_s13  }
   0xe   : > { %146 = sbr.rel (%p143_p9) target bundleno = 314 (0x13a), region = 32  ;;  %v1124_v1 = vld [vmem:[%s1517_s1 + $0xc0] sm:$0xff] (!%p143_p9)   ;;  %969 = vmatprep.subr.bf16.mxu0 (!%p143_p9), %v1123_v0  ;;  %v1128_v5 = vld [vmem:[%s1517_s1 + $0xc8] sm:$0xff] (!%p143_p9)   ;;  %v1132_v9 = vld [vmem:[%s1517_s1 + $0xd0] sm:$0xff] (!%p143_p9)   ;;  %p168_p10 = scmp.lt.s32.totalorder (!%p143_p9), %s900_s9, 15 }
   0xf   : > { %v1125_v2 = vld [vmem:[%s1517_s1] sm:$0xff] (!%p143_p9)   ;;  %1009 = vmatprep.subr.bf16.mxu1 (!%p143_p9), %v1124_v1  ;;  %v1129_v6 = vld [vmem:[%s1517_s1 + $0x8] sm:$0xff] (!%p143_p9)   ;;  %v1133_v10 = vld [vmem:[%s1517_s1 + $0x10] sm:$0xff] (!%p143_p9)   ;;  %s968_s6 = sshll.u32 (!%p143_p9), %s1295_s16, 10  ;;  %s1475_s17 = scalar_lea.sflag (!%p143_p9), [#allocation3], %s164_s5 }
  0x10   : > { %v1126_v3 = vld [vmem:[%s1517_s1 + $0x80] sm:$0xff] (!%p143_p9)   ;;  %970 = vmatpush3.bf16.msra.mxu0 (!%p143_p9), %v1125_v2  ;;  %v1130_v7 = vld [vmem:[%s1517_s1 + $0x88] sm:$0xff] (!%p143_p9)   ;;  %v1134_v11 = vld [vmem:[%s1517_s1 + $0x90] sm:$0xff] (!%p143_p9)   ;;  %s1469_s11 = scalar_lea.hbm (!%p143_p9), %s1519_s3, %s968_s6  ;;  %s1251_s20 = smov (!%p143_p9), [#allocation2]  }
  0x11   : > { %1010 = vmatpush3.bf16.msra.mxu1 (!%p143_p9), %v1126_v3  ;;  %971 = vmatprep.subr.bf16.mxu0 (!%p143_p9), %v1127_v4  ;;  %v1135_v12 = vld [vmem:[%s1517_s1 + $0x58] sm:$0xff] (!%p143_p9)   ;;  %v1139_v16 = vld [vmem:[%s1517_s1 + $0x60] sm:$0xff] (!%p143_p9)   ;;  %v1143_v20 = vld [vmem:[%s1517_s1 + $0x68] sm:$0xff] (!%p143_p9)  }
  0x12   : > { %1011 = vmatprep.subr.bf16.mxu1 (!%p143_p9), %v1128_v5  ;;  %v1136_v13 = vld [vmem:[%s1517_s1 + $0xd8] sm:$0xff] (!%p143_p9)   ;;  %v1140_v17 = vld [vmem:[%s1517_s1 + $0xe0] sm:$0xff] (!%p143_p9)   ;;  %v1144_v21 = vld [vmem:[%s1517_s1 + $0xe8] sm:$0xff] (!%p143_p9)  }
  0x13   : > { %v1137_v14 = vld [vmem:[%s1517_s1 + $0x18] sm:$0xff] (!%p143_p9)   ;;  %v1141_v18 = vld [vmem:[%s1517_s1 + $0x20] sm:$0xff] (!%p143_p9)   ;;  %v1145_v22 = vld [vmem:[%s1517_s1 + $0x28] sm:$0xff] (!%p143_p9)  }
  0x14   : > { %972 = vmatpush3.bf16.msra.mxu0 (!%p143_p9), %v1129_v6  ;;  %v1138_v15 = vld [vmem:[%s1517_s1 + $0x98] sm:$0xff] (!%p143_p9)   ;;  %v1142_v19 = vld [vmem:[%s1517_s1 + $0xa0] sm:$0xff] (!%p143_p9)   ;;  %v1146_v23 = vld [vmem:[%s1517_s1 + $0xa8] sm:$0xff] (!%p143_p9)  }
  0x15   : > { %1012 = vmatpush3.bf16.msra.mxu1 %v1130_v7  ;;  %973 = vmatprep.subr.bf16.mxu0 %v1131_v8  ;;  %s1527_s9 = smov (!%p168_p10, %s900_s9), 15  ;;  %v1147_v24 = vld [vmem:[%s1517_s1 + $0x70] sm:$0xff]   ;;  %v1151_v28 = vld [vmem:[%s1517_s1 + $0x78] sm:$0xff]   ;;  %v1161_v36 = vld [vmem:[%s1517_s1 + $0x100] sm:$0xff]  }
  0x16   : > { %1013 = vmatprep.subr.bf16.mxu1 %v1132_v9  ;;  %v1148_v25 = vld [vmem:[%s1517_s1 + $0xf0] sm:$0xff]   ;;  %s1081_s24 = smul.u32 20, %s1527_s9  ;;  %v1152_v29 = vld [vmem:[%s1517_s1 + $0xf8] sm:$0xff]   ;;  %v1168_v39 = vld [vmem:[%s1517_s1 + $0x108] sm:$0xff]   ;;  %s899_s9 = sshll.u32 %s164_s5, 6 }
  0x17   : > { %v1149_v26 = vld [vmem:[%s1517_s1 + $0x30] sm:$0xff]   ;;  %v1153_v30 = vld [vmem:[%s1517_s1 + $0x38] sm:$0xff]   ;;  %v902_v58 = vld [vmem:[%s1518_s2] ss:$0 sm:$0xff] }
  0x18   : > { %974 = vmatpush3.bf16.msra.mxu0 %v1133_v10  ;;  %v1150_v27 = vld [vmem:[%s1517_s1 + $0xb0] sm:$0xff]   ;;  %s1416_s7 = scalar_lea.vmem %s1516_s0, %s1081_s24  ;;  %v1154_v31 = vld [vmem:[%s1517_s1 + $0xb8] sm:$0xff]   ;;  %s1191_s24 = sshll.u32 %s1251_s20, 4  ;;  %s1192_s24 = int_to_ptr.vmem [resolvable:$false] %s1191_s24 }
  0x19   : > { %1014 = vmatpush3.bf16.msra.mxu1 %v1134_v11  ;;  %975 = vmatprep.subr.bf16.mxu0 %v1135_v12  ;;  %v1155_v32 = vld [vmem:[%s1416_s7] ss:$20 sps:$4 sm:$0xff]   ;;  %v1157_v33 = vld [vmem:[%s1416_s7 + $0x4] ss:$20 sps:$4 sm:$0xff]   ;;  %v1158_v34 = vld [vmem:[%s1416_s7 + $0x8] ss:$20 sps:$4 sm:$0xff]  }
  0x1a   : > { %1015 = vmatprep.subr.bf16.mxu1 %v1136_v13  ;;  %v1160_v35 = vld [vmem:[%s1416_s7 + $0xc] ss:$20 sps:$4 sm:$0xff]   ;;  %640 = vmatprep.mubr.bf16.mxu0 %v1157_v33  ;;  %v1164_v38 = vld [vmem:[%s1416_s7 + $0x34] ss:$20 sps:$4 sm:$0xff]   ;;  %v1167_v41 = vld [vmem:[%s1416_s7 + $0x30] ss:$20 sps:$4 sm:$0xff]  }
  0x1b   : > { %705 = vmatprep.mubr.bf16.mxu1 %v1160_v35  ;;  %v1162_v37 = vld [vmem:[%s1416_s7 + $0x2c] ss:$20 sps:$4 sm:$0xff]   ;;  %v1166_v40 = vld [vmem:[%s1416_s7 + $0x28] ss:$20 sps:$4 sm:$0xff]   ;;  %v1175_v44 = vld [vmem:[%s1517_s1 + $0x110] sm:$0xff]   ;;  %s1193_s25 = scalar_lea.vmem %s1192_s24, 2048 }
  0x1c   : > { %976 = vmatpush3.bf16.msra.mxu0 %v1137_v14  ;;  %v1169_v42 = vld [vmem:[%s1416_s7 + $0x54] ss:$20 sps:$4 sm:$0xff]   ;;  %v1171_v43 = vld [vmem:[%s1416_s7 + $0x5c] ss:$20 sps:$4 sm:$0xff]   ;;  %v1174_v47 = vld [vmem:[%s1416_s7 + $0x58] ss:$20 sps:$4 sm:$0xff]  }
  0x1d   : > { %1016 = vmatpush3.bf16.msra.mxu1 %v1138_v15  ;;  %977 = vmatprep.subr.bf16.mxu0 %v1139_v16  ;;  %v1182_v45 = vld [vmem:[%s1517_s1 + $0x118] sm:$0xff]   ;;  %v1173_v46 = vld [vmem:[%s1416_s7 + $0x50] ss:$20 sps:$4 sm:$0xff]   ;;  %v1181_v51 = vld [vmem:[%s1416_s7 + $0x80] ss:$20 sps:$4 sm:$0xff]  }
  0x1e   : > { %1017 = vmatprep.subr.bf16.mxu1 %v1140_v17  ;;  %v1176_v48 = vld [vmem:[%s1416_s7 + $0x7c] ss:$20 sps:$4 sm:$0xff]   ;;  %v1178_v49 = vld [vmem:[%s1416_s7 + $0x84] ss:$20 sps:$4 sm:$0xff]   ;;  %v1184_v53 = vld [vmem:[%s1416_s7 + $0x60] ss:$20 sps:$4 sm:$0xff]  }
  0x1f   : > { %v1180_v50 = vld [vmem:[%s1416_s7 + $0x78] ss:$20 sps:$4 sm:$0xff]   ;;  %v1183_v52 = vld [vmem:[%s1416_s7 + $0x10] ss:$20 sps:$4 sm:$0xff]   ;;  %v1186_v55 = vld [vmem:[%s1416_s7 + $0x88] ss:$20 sps:$4 sm:$0xff]  }
  0x20   : > { %978 = vmatpush3.bf16.msra.mxu0 %v1141_v18  ;;  %v1185_v54 = vld [vmem:[%s1416_s7 + $0x38] ss:$20 sps:$4 sm:$0xff]   ;;  %s166_s7 = scalar_lea.vmem [#allocation2], %s899_s9 }
  0x21   : > { %1018 = vmatpush3.bf16.msra.mxu1 %v1142_v19  ;;  %979 = vmatprep.subr.bf16.mxu0 %v1143_v20  ;;  %s833_s8 = sshll.u32 %s166_s7, 4  ;;  %s1471_s8 = int_to_ptr.vmem [resolvable:$true] %s833_s8 }
  0x22   : > { %1019 = vmatprep.subr.bf16.mxu1 %v1144_v21  ;;  %s1187_s19 = scalar_lea.vmem %s1471_s8, 1024  ;;  %p1194_p0 = scmp.lt.s32.totalorder %s1471_s8, %s1192_s24 }
  0x23   : > { %p1188_p11 = scmp.ne.s32.totalorder %s1471_s8, %s1187_s19  ;;  %p1195_p1 = scmp.lt.s32.totalorder %s1193_s25, %s1187_s19 }
  0x24   : > { %980 = vmatpush3.bf16.msra.mxu0 %v1145_v22 }
  0x25   : > { %1020 = vmatpush3.bf16.msra.mxu1 %v1146_v23  ;;  %981 = vmatprep.subr.bf16.mxu0 %v1147_v24  ;;  %p1189_p12 = pnand %p1188_p11, %p1312_p5  ;;  %p1196_p2 = por %p1195_p1, %p1194_p0 }
  0x26   : > { %1021 = vmatprep.subr.bf16.mxu1 %v1148_v25 }
  0x27   : > { %p1190_p13 = pneg %p1189_p12 }
  0x28   : > { %982 = vmatpush3.bf16.msra.mxu0 %v1149_v26 }
  0x29   : > { %1022 = vmatpush3.bf16.msra.mxu1 %v1150_v27  ;;  %983 = vmatprep.subr.bf16.mxu0 %v1151_v28  ;;  %p1197_p3 = pnand %p1196_p2, %p1190_p13 }
  0x2a   : > { %1023 = vmatprep.subr.bf16.mxu1 %v1152_v29 }
  0x2c   : > { %984 = vmatpush3.bf16.msra.mxu0 %v1153_v30 }
  0x2d   : > { %1024 = vmatpush3.bf16.msra.mxu1 %v1154_v31  ;;  %1057 = vmatprep.subr.bf16.mxu0 %v1161_v36 }
  0x2e   : > { %1073 = vmatprep.subr.bf16.mxu1 %v1161_v36 }
  0x2f   : > { %641 = vmatmul.mubr.bf16.vlgmr.msra.gmra.mrb[0].mxu0 %v1155_v32 }
  0x30   : > { %706 = vmatmul.mubr.bf16.vlgmr.msra.gmra.mrb[0].mxu1 %v1158_v34  ;;  %1058 = vmatpush3.bf16.msra.mxu0 %v1161_v36 }
  0x31   : > { %1077 = vmatpush3.bf16.msra.mxu1 %v1161_v36  ;;  %648 = vmatprep.mubr.bf16.mxu0 %v1162_v37 }
  0x32   : > { %713 = vmatprep.mubr.bf16.mxu1 %v1164_v38  ;;  %1059 = vmatprep.subr.bf16.mxu0 %v1168_v39 }
  0x33   : > { %1074 = vmatprep.subr.bf16.mxu1 %v1168_v39 }
  0x34   : > { %1060 = vmatpush3.bf16.msra.mxu0 %v1168_v39 }
  0x35   : > { %1078 = vmatpush3.bf16.msra.mxu1 %v1168_v39  ;;  %1061 = vmatprep.subr.bf16.mxu0 %v1175_v44 }
  0x36   : > { %1075 = vmatprep.subr.bf16.mxu1 %v1175_v44 }
  0x37   : > { %649 = vmatmul.mubr.bf16.gmra.mrb[4].mxu0 %v1166_v40 }
  0x38   : > { %714 = vmatmul.mubr.bf16.gmra.mrb[4].mxu1 %v1167_v41  ;;  %656 = vmatprep.mubr.bf16.mxu0 %v1169_v42 }
  0x39   : > { %721 = vmatprep.mubr.bf16.mxu1 %v1171_v43  ;;  %1062 = vmatpush3.bf16.msra.mxu0 %v1175_v44 }
  0x3a   : > { %1079 = vmatpush3.bf16.msra.mxu1 %v1175_v44  ;;  %1063 = vmatprep.subr.bf16.mxu0 %v1182_v45 }
  0x3b   : > { %1076 = vmatprep.subr.bf16.mxu1 %v1182_v45 }
  0x3d   : > { %1064 = vmatpush3.bf16.msra.mxu0 %v1182_v45 }
  0x3e   : > { %1080 = vmatpush3.bf16.msra.mxu1 %v1182_v45 }
  0x3f   : > { %657 = vmatmul.mubr.bf16.gmra.mrb[8].mxu0 %v1173_v46 }
  0x40   : > { %722 = vmatmul.mubr.bf16.gmra.mrb[8].mxu1 %v1174_v47  ;;  %664 = vmatprep.mubr.bf16.mxu0 %v1176_v48 }
  0x41   : > { %729 = vmatprep.mubr.bf16.mxu1 %v1178_v49 }
  0x47   : > { %665 = vmatmul.mubr.bf16.gmra.mrb[12].mxu0 %v1180_v50 }
  0x48   : > { %730 = vmatmul.mubr.bf16.gmra.mrb[12].mxu1 %v1181_v51  ;;  %1065 = vmatprep.mubr.msk.bf16.mxu0 %vm595_vm0, %v1183_v52 }
  0x49   : > { %1069 = vmatprep.mubr.msk.bf16.mxu1 %vm595_vm0, %v1184_v53 }
  0x4f   : > { %1066 = vmatmul.mubr.msk.bf16.vlgmr.msra.gmra.mrb[16].mxu0 %vm595_vm0, %v1185_v54 }
  0x50   : > { %1070 = vmatmul.mubr.msk.bf16.vlgmr.msra.gmra.mrb[16].mxu1 %vm595_vm0, %v1186_v55 }
 0x102   : > { %v985_v56 = vpop.f32.mrb[0].mxu0 }
 0x103   : > { %v1025_v57 = vpop.f32.mrb[0].mxu1  ;;  %v986_v59 = vpop.f32.mrb[1].mxu0 }
 0x104   : > { %v987_v60 = vadd.f32 %v986_v59, %v985_v56  ;;  %v1026_v61 = vpop.f32.mrb[1].mxu1  ;;  %v988_v62 = vpop.f32.mrb[2].mxu0 }
 0x105   : > { %v1027_v63 = vadd.f32 %v1026_v61, %v1025_v57  ;;  %v1028_v0 = vpop.f32.mrb[2].mxu1  ;;  %v989_v1 = vpop.f32.mrb[3].mxu0 }
 0x106   : > { %v643_v2 = vadd.f32 %v987_v60, %v902_v58  ;;  %v990_v3 = vadd.f32 %v989_v1, %v988_v62  ;;  %v1029_v4 = vpop.f32.mrb[3].mxu1 }
 0x107   : > { %v1030_v5 = vadd.f32 %v1029_v4, %v1028_v0 }
 0x108   : > { %v646_v6 = vadd.f32 %v990_v3, %v902_v58  ;;  %v708_v7 = vadd.f32 %v1027_v63, %v643_v2 }
 0x10a   : > { %v991_v8 = vpop.f32.mrb[4].mxu0  ;;  %v1459_v9 = vadd.f32 %v1030_v5, %v646_v6 }
 0x10b   : > { %v1031_v10 = vpop.f32.mrb[4].mxu1  ;;  %v992_v11 = vpop.f32.mrb[5].mxu0 }
 0x10c   : > { %v993_v12 = vadd.f32 %v992_v11, %v991_v8  ;;  %v1032_v13 = vpop.f32.mrb[5].mxu1  ;;  %v994_v14 = vpop.f32.mrb[6].mxu0 }
 0x10d   : > { %v1033_v15 = vadd.f32 %v1032_v13, %v1031_v10  ;;  %v1034_v16 = vpop.f32.mrb[6].mxu1  ;;  %v995_v17 = vpop.f32.mrb[7].mxu0 }
 0x10e   : > { %v651_v18 = vadd.f32 %v993_v12, %v902_v58  ;;  %v996_v19 = vadd.f32 %v995_v17, %v994_v14  ;;  %v1035_v20 = vpop.f32.mrb[7].mxu1 }
 0x10f   : > { %v1036_v21 = vadd.f32 %v1035_v20, %v1034_v16 }
 0x110   : > { %v654_v22 = vadd.f32 %v996_v19, %v902_v58  ;;  %v716_v23 = vadd.f32 %v1033_v15, %v651_v18 }
 0x112   : > { %v997_v24 = vpop.f32.mrb[8].mxu0  ;;  %v719_v25 = vadd.f32 %v1036_v21, %v654_v22 }
 0x113   : > { %v1037_v26 = vpop.f32.mrb[8].mxu1  ;;  %v998_v27 = vpop.f32.mrb[9].mxu0 }
 0x114   : > { %v999_v28 = vadd.f32 %v998_v27, %v997_v24  ;;  %v1038_v29 = vpop.f32.mrb[9].mxu1  ;;  %v1000_v30 = vpop.f32.mrb[10].mxu0 }
 0x115   : > { %v1039_v31 = vadd.f32 %v1038_v29, %v1037_v26  ;;  %v1040_v32 = vpop.f32.mrb[10].mxu1  ;;  %v1001_v33 = vpop.f32.mrb[11].mxu0 }
 0x116   : > { %v659_v34 = vadd.f32 %v999_v28, %v902_v58  ;;  %v1002_v35 = vadd.f32 %v1001_v33, %v1000_v30  ;;  %v1041_v36 = vpop.f32.mrb[11].mxu1 }
 0x117   : > { %v1042_v37 = vadd.f32 %v1041_v36, %v1040_v32 }
 0x118   : > { %v662_v38 = vadd.f32 %v1002_v35, %v902_v58  ;;  %v724_v39 = vadd.f32 %v1039_v31, %v659_v34 }
 0x11a   : > { %v1003_v40 = vpop.f32.mrb[12].mxu0  ;;  %v727_v41 = vadd.f32 %v1042_v37, %v662_v38 }
 0x11b   : > { %v1043_v42 = vpop.f32.mrb[12].mxu1  ;;  %v1004_v43 = vpop.f32.mrb[13].mxu0 }
 0x11c   : > { %v1005_v44 = vadd.f32 %v1004_v43, %v1003_v40  ;;  %v1044_v45 = vpop.f32.mrb[13].mxu1  ;;  %v1006_v46 = vpop.f32.mrb[14].mxu0 }
 0x11d   : > { %v1045_v47 = vadd.f32 %v1044_v45, %v1043_v42  ;;  %v1046_v48 = vpop.f32.mrb[14].mxu1  ;;  %v1007_v49 = vpop.f32.mrb[15].mxu0 }
 0x11e   : > { %v667_v50 = vadd.f32 %v1005_v44, %v902_v58  ;;  %v1008_v51 = vadd.f32 %v1007_v49, %v1006_v46  ;;  %v1047_v52 = vpop.f32.mrb[15].mxu1 }
 0x11f   : > { %v1048_v53 = vadd.f32 %v1047_v52, %v1046_v48 }
 0x120   : > { %v670_v54 = vadd.f32 %v1008_v51, %v902_v58  ;;  %v732_v55 = vadd.f32 %v1045_v47, %v667_v50 }
 0x122   : > { %v1067_v56 = vpop.f32.mrb[16].mxu0  ;;  %v735_v57 = vadd.f32 %v1048_v53, %v670_v54 }
 0x123   : > { %v781_v59 = vadd.f32 %v1067_v56, %v716_v23  ;;  %v1071_v60 = vpop.f32.mrb[16].mxu1  ;;  %v772_v61 = vpop.f32.mrb[17].mxu0 }
 0x124   : > { %v797_v62 = vadd.f32 %v1071_v60, %v732_v55  ;;  %v773_v63 = vadd.f32 %v772_v61, %v708_v7  ;;  %v788_v0 = vpop.f32.mrb[17].mxu1  ;;  %v1068_v1 = vpop.f32.mrb[18].mxu0 }
 0x125   : > { %v805_v2 = vmax.f32 %v781_v59, 0.0  ;;  %v789_v3 = vadd.f32 %v788_v0, %v724_v39  ;;  %v784_v4 = vadd.f32 %v1068_v1, %v719_v25  ;;  %v1072_v5 = vpop.f32.mrb[18].mxu1  ;;  %v775_v6 = vpop.f32.mrb[19].mxu0 }
 0x126   : > { %v809_v58 = vmax.f32 %v797_v62, 0.0  ;;  %v803_v8 = vmax.f32 %v773_v63, 0.0  ;;  %v800_v10 = vadd.f32 %v1072_v5, %v735_v57  ;;  %v776_v11 = vadd.f32 %v775_v6, %v1459_v9  ;;  %v791_v12 = vpop.f32.mrb[19].mxu1 }
 0x127   : > { %813 = vst [vmem:[%s166_s7 + $0x10] sm:$0xff] %v805_v2  ;;  %v807_v13 = vmax.f32 %v789_v3, 0.0  ;;  %v806_v7 = vmax.f32 %v784_v4, 0.0  ;;  %v792_v14 = vadd.f32 %v791_v12, %v727_v41 }
 0x128   : > { %817 = vst [vmem:[%s166_s7 + $0x30] sm:$0xff] %v809_v58  ;;  %811 = vst [vmem:[%s166_s7] sm:$0xff] %v803_v8  ;;  %v810_v15 = vmax.f32 %v800_v10, 0.0  ;;  %v804_v16 = vmax.f32 %v776_v11, 0.0 }
 0x129   : > { %815 = vst [vmem:[%s166_s7 + $0x20] sm:$0xff] %v807_v13  ;;  %814 = vst [vmem:[%s166_s7 + $0x18] sm:$0xff] %v806_v7  ;;  %v808_v9 = vmax.f32 %v792_v14, 0.0 }
 0x12a   : > { %818 = vst [vmem:[%s166_s7 + $0x38] sm:$0xff] %v810_v15  ;;  %812 = vst [vmem:[%s166_s7 + $0x8] sm:$0xff] %v804_v16 }
 0x12b   : > { %816 = vst [vmem:[%s166_s7 + $0x28] sm:$0xff] %v808_v9 }
 0x12c   : > { %1200 = shalt.err (!%p1197_p3)
}
 0x12d   : > { %s1201_s26 = scalar_lea.hbm %s1469_s11, 1024  ;;  %s1205_s29 = scalar_lea.hbm %s1519_s3, 2048 }
 0x12e   : > { %p1202_p4 = scmp.ne.s32.totalorder %s1469_s11, %s1201_s26  ;;  %p1206_p9 = scmp.lt.u32.totalorder %s1469_s11, %s1519_s3 }
 0x12f   : > { %p1207_p10 = scmp.lt.u32.totalorder %s1205_s29, %s1201_s26  ;;  %p1209_p12 = scmp.lt.u32.totalorder %s1201_s26, %s1469_s11 }
 0x130   : > { %p1203_p7 = pnand %p1202_p4, %p1312_p5 }
 0x131   : > { %p1208_p11 = por %p1207_p10, %p1206_p9 }
 0x132   : > { %p1204_p8 = pneg %p1203_p7 }
 0x133   : > { %p1210_p13 = por %p1209_p12, %p1208_p11 }
 0x135   : > { %p1211_p0 = pnand %p1210_p13, %p1204_p8 }
 0x137   : > { %1214 = shalt.err (!%p1211_p0)
}
 0x138   : > { %s1252_s5 = smov 128   ;;  %s1253_s9 = smov 8  }
 0x139   : > { %1082 = dma.vmem_to_hbm [thread:$0]  (%p1312_p5), %s1471_s8, 1024, %s1469_s11, %s1475_s17, %s1252_s5, %s1252_s5, %s1253_s9  }
 0x13a PF: > { %p1088_p1 = scmp.ge.s32.totalorder %s1249_s15, 2  ;;  %s848_s6 = sand.u32 1, %s1237_s12  }
 0x13b   : > { %s849_s7 = scalar_lea.sflag [#allocation3], %s848_s6 }
 0x13c   : > { %p1085_p2 = pnand %p1088_p1, %p1316_p6 }
 0x13e   : > { %1232 = dma.done.wait (!%p1085_p2), %s849_s7, 1024  }
 0x13f   : > { %1234 = vsyncadd (!%p1085_p2), %s849_s7, 4294966272  ;;  %p13_p3 = scmp.ge.s32.totalorder %s1299_s18, 4   ;;  %s1522_s12 = smov %s1241_s13 }
 0x140   : > { %s1523_s13 = smov %s1245_s14  ;;  %s1524_s14 = smov %s1310_s21 }
 0x141   : > { %s1525_s15 = smov %s1299_s18  ;;  %15 = sbr.rel (!%p13_p3) target bundleno = 3 (0x3), region = 67 }
 0x148   :  { %854 = vsyncpa [#allocation3], 1 }
 0x149   :  { %856 = vsyncpa [#allocation3 + $0x1], 1 }

</bundles_post_ra>
